<compile_context>
chip_gen: v6e
topology: v6e:2x2x1
jax: 0.10.0
libtpu: 0.0.40
codegen_flags: <defaults>
</compile_context>

<pallas_src>
import functools

import jax
import jax.numpy as jnp
from jax.experimental import pallas as pl
from jax.experimental.pallas import tpu as pltpu


def _round_up(x: int, m: int) -> int:
    return ((x + m - 1) // m) * m


def policy_mlp_kernel(x_ref, w1_ref, b1_ref, w2_ref, b2_ref, o_ref):
    # hidden = relu(x @ W1 + b1) : MXU matmul with f32 accumulation, VPU bias/relu.
    x = x_ref[...]
    h = jnp.dot(x.astype(w1_ref.dtype), w1_ref[...],
                preferred_element_type=jnp.float32) + b1_ref[...]
    h = jnp.maximum(h, 0.0)
    # out = h @ W2 + b2
    out = jnp.dot(h.astype(w2_ref.dtype), w2_ref[...],
                  preferred_element_type=jnp.float32) + b2_ref[...]
    o_ref[...] = out.astype(o_ref.dtype)


def prepare_padded_params(w1, b1, w2, b2, matmul_dtype=jnp.float32):
    """One-time padding of weights/biases: hidden & output dims -> multiples of 128.

    K (num_inputs) is kept at its true size.  Zero padding is numerically exact:
    padded hidden columns get zero W2 rows, padded biases are zero, relu(0)=0.
    Call this once at init and reuse the result for every forward call.
    """
    num_inputs, num_hidden = w1.shape
    num_outputs = w2.shape[1]
    Hp = _round_up(num_hidden, 128)
    Np = _round_up(num_outputs, 128)
    w1p = jnp.zeros((num_inputs, Hp), matmul_dtype).at[:, :num_hidden].set(
        w1.astype(matmul_dtype))
    w2p = jnp.zeros((Hp, Np), matmul_dtype).at[:num_hidden, :num_outputs].set(
        w2.astype(matmul_dtype))
    # Biases stay f32 (VPU-side adds; v5e has no bf16 VPU).
    b1p = jnp.zeros((1, Hp), jnp.float32).at[:, :num_hidden].set(
        b1.reshape(1, -1).astype(jnp.float32))
    b2p = jnp.zeros((1, Np), jnp.float32).at[:, :num_outputs].set(
        b2.reshape(1, -1).astype(jnp.float32))
    return w1p, b1p, w2p, b2p


@functools.partial(jax.jit, static_argnames=("num_outputs", "row_tile"))
def policy_model_forward(x, w1p, b1p, w2p, b2p, *, num_outputs, row_tile=1024):
    """Pallas forward pass for PolicyModel: Linear -> ReLU -> Linear.

    x   : [B, num_inputs]  float32 (unpadded, true K)
    w1p : [num_inputs, Hp] padded weights from prepare_padded_params
    b1p : [1, Hp]
    w2p : [Hp, Np]
    b2p : [1, Np]
    returns [B, num_outputs]
    """
    out_dtype = x.dtype
    B, num_inputs = x.shape
    Hp = w1p.shape[1]
    Np = w2p.shape[1]
    # Real per-call footprint is ~1-2 MiB; keep a modest cap well under v7x's
    # 64 MiB/TC physical VMEM.
    vmem_limit = 16 * 1024 * 1024
    out_shape = jax.ShapeDtypeStruct((B, Np), out_dtype)

    if B <= row_tile:
        # Small-batch path: gridless, whole arrays VMEM-resident, no pipeline
        # prologue/epilogue, no per-call padding of x.
        out_p = pl.pallas_call(
            policy_mlp_kernel,
            out_shape=out_shape,
            in_specs=[pl.BlockSpec(memory_space=pltpu.MemorySpace.VMEM)] * 5,
            out_specs=pl.BlockSpec(memory_space=pltpu.MemorySpace.VMEM),
            compiler_params=pltpu.CompilerParams(vmem_limit_bytes=vmem_limit),
        )(x, w1p, b1p, w2p, b2p)
    else:
        # Large-batch path: tile rows of x / out; weights & biases use constant
        # index_maps so they are DMA'd once and stay VMEM-resident across the
        # whole grid.  The last block may be partial (masked store) so B is
        # never rounded up to a full tile.
        num_tiles = pl.cdiv(B, row_tile)
        if num_tiles > 1 and num_tiles % 2 == 1:
            num_tiles += 1          # even grid -> balanced across v7x's 2 TCs
        tile = _round_up(pl.cdiv(B, num_tiles), 8)   # sublane-aligned tile
        num_tiles = pl.cdiv(B, tile)
        out_p = pl.pallas_call(
            policy_mlp_kernel,
            out_shape=out_shape,
            grid=(num_tiles,),
            in_specs=[
                # x block keeps the TRUE K (full-dim block -> exempt from 128 rule).
                pl.BlockSpec((tile, num_inputs), lambda i: (i, 0)),
                pl.BlockSpec((num_inputs, Hp), lambda i: (0, 0)),
                pl.BlockSpec((1, Hp), lambda i: (0, 0)),
                pl.BlockSpec((Hp, Np), lambda i: (0, 0)),
                pl.BlockSpec((1, Np), lambda i: (0, 0)),
            ],
            # Lane-dense (128-wide multiple) output store.
            out_specs=pl.BlockSpec((tile, Np), lambda i: (i, 0)),
            compiler_params=pltpu.CompilerParams(
                # Independent batch axis -> shard across v7x's two TensorCores.
                dimension_semantics=("parallel",),
                vmem_limit_bytes=vmem_limit,
            ),
        )(x, w1p, b1p, w2p, b2p)

    # Cheap column slice back to the true output width.
    return out_p[:, :num_outputs]


def init_params(key, num_inputs, num_hidden, num_outputs):
    """Deterministic init matching PyTorch Linear shapes (stored pre-transposed)."""
    k1, k2, k3, k4 = jax.random.split(key, 4)
    # PyTorch: hidden.weight [num_hidden, num_inputs]; we keep W1 = weight.T
    w1 = jax.random.uniform(k1, (num_inputs, num_hidden), jnp.float32, -0.5, 0.5)
    b1 = jax.random.uniform(k2, (1, num_hidden), jnp.float32, -0.5, 0.5)
    # PyTorch: decoder.weight [num_outputs, num_hidden]; W2 = weight.T
    w2 = jax.random.uniform(k3, (num_hidden, num_outputs), jnp.float32, -0.5, 0.5)
    b2 = jax.random.uniform(k4, (1, num_outputs), jnp.float32, -0.5, 0.5)
    return w1, b1, w2, b2


if __name__ == "__main__":
    # Small shapes consistent with the module's forward pass.
    B, num_inputs, num_hidden, num_outputs = 8, 4, 32, 4

    key = jax.random.PRNGKey(0)
    kx, kp = jax.random.split(key)
    x = jax.random.normal(kx, (B, num_inputs), dtype=jnp.float32)
    w1, b1, w2, b2 = init_params(kp, num_inputs, num_hidden, num_outputs)

    # Pad weights ONCE; reused by every forward call (no per-call pad ops).
    w1p, b1p, w2p, b2p = prepare_padded_params(w1, b1, w2, b2)

    out = policy_model_forward(x, w1p, b1p, w2p, b2p, num_outputs=num_outputs)
    out = jax.block_until_ready(out)

    # Pure-JAX reference check (Linear -> ReLU -> Linear).
    ref = jnp.maximum(x @ w1 + b1, 0.0) @ w2 + b2
    assert out.shape == (B, num_outputs)
    assert jnp.allclose(out, ref, atol=1e-5, rtol=1e-5)

    # Exercise the tiled large-batch ("parallel" grid) path with a batch that is
    # NOT a multiple of the tile size (partial last block, no B padding).
    B_big = 1500
    x_big = jax.random.normal(jax.random.PRNGKey(1), (B_big, num_inputs), jnp.float32)
    out_big = jax.block_until_ready(
        policy_model_forward(x_big, w1p, b1p, w2p, b2p, num_outputs=num_outputs))
    ref_big = jnp.maximum(x_big @ w1 + b1, 0.0) @ w2 + b2
    assert out_big.shape == (B_big, num_outputs)
    assert jnp.allclose(out_big, ref_big, atol=1e-5, rtol=1e-5)

    # Optional bf16-MXU-operand path (f32 accumulation): looser tolerance check.
    w1b, b1b, w2b, b2b = prepare_padded_params(w1, b1, w2, b2,
                                               matmul_dtype=jnp.bfloat16)
    out_bf16 = jax.block_until_ready(
        policy_model_forward(x, w1b, b1b, w2b, b2b, num_outputs=num_outputs))
    assert jnp.allclose(out_bf16, ref, atol=2e-2, rtol=2e-2)

    print("KERNEL_OK")
</pallas_src>

<mosaic_0001>
module attributes {stable_mosaic.version = 11 : i64} {
  func.func @policy_mlp_kernel(%arg0: memref<8x4xf32, #tpu.memory_space<vmem>>, %arg1: memref<4x128xf32, #tpu.memory_space<vmem>>, %arg2: memref<1x128xf32, #tpu.memory_space<vmem>>, %arg3: memref<128x128xf32, #tpu.memory_space<vmem>>, %arg4: memref<1x128xf32, #tpu.memory_space<vmem>>, %arg5: memref<8x128xf32, #tpu.memory_space<vmem>>) attributes {dimension_semantics = [], scalar_prefetch = 0 : i64, scratch_operands = 0 : i64, tpu.core_type = #tpu.core_type<tc>} {
    %c0 = arith.constant 0 : index
    %c0_0 = arith.constant 0 : index
    %0 = vector.load %arg0[%c0, %c0_0] : memref<8x4xf32, #tpu.memory_space<vmem>>, vector<8x4xf32>
    %c0_1 = arith.constant 0 : index
    %c0_2 = arith.constant 0 : index
    %1 = vector.load %arg1[%c0_1, %c0_2] : memref<4x128xf32, #tpu.memory_space<vmem>>, vector<4x128xf32>
    %cst = arith.constant dense<0.000000e+00> : vector<8x128xf32>
    %2 = tpu.matmul %0, %1, %cst {dimension_numbers = #tpu.dot_dimension_numbers<[1], [0], [0], [1], [0, 0, 1, 1], [], []>} : vector<8x4xf32>, vector<4x128xf32>, vector<8x128xf32> -> vector<8x128xf32>
    %c0_3 = arith.constant 0 : index
    %c0_4 = arith.constant 0 : index
    %3 = vector.load %arg2[%c0_3, %c0_4] : memref<1x128xf32, #tpu.memory_space<vmem>>, vector<1x128xf32>
    %4 = vector.broadcast %3 : vector<1x128xf32> to vector<8x128xf32>
    %5 = arith.addf %2, %4 : vector<8x128xf32>
    %cst_5 = arith.constant 0.000000e+00 : f32
    %6 = vector.broadcast %cst_5 : f32 to vector<8x128xf32>
    %7 = arith.maximumf %5, %6 : vector<8x128xf32>
    %c0_6 = arith.constant 0 : index
    %c0_7 = arith.constant 0 : index
    %8 = vector.load %arg3[%c0_6, %c0_7] : memref<128x128xf32, #tpu.memory_space<vmem>>, vector<128x128xf32>
    %cst_8 = arith.constant dense<0.000000e+00> : vector<8x128xf32>
    %9 = tpu.matmul %7, %8, %cst_8 {dimension_numbers = #tpu.dot_dimension_numbers<[1], [0], [0], [1], [0, 0, 1, 1], [], []>} : vector<8x128xf32>, vector<128x128xf32>, vector<8x128xf32> -> vector<8x128xf32>
    %c0_9 = arith.constant 0 : index
    %c0_10 = arith.constant 0 : index
    %10 = vector.load %arg4[%c0_9, %c0_10] : memref<1x128xf32, #tpu.memory_space<vmem>>, vector<1x128xf32>
    %11 = vector.broadcast %10 : vector<1x128xf32> to vector<8x128xf32>
    %12 = arith.addf %9, %11 : vector<8x128xf32>
    %c0_11 = arith.constant 0 : index
    %c0_12 = arith.constant 0 : index
    %13 = vector.load %arg5[%c0_11, %c0_12] : memref<8x128xf32, #tpu.memory_space<vmem>>, vector<8x128xf32>
    tpu.vector_store %arg5[%c0_11, %c0_12], %12 {strides = array<i32>} : memref<8x128xf32, #tpu.memory_space<vmem>>, vector<8x128xf32>,
    return
  }
}

</mosaic_0001>

<bundles_post_ra>
// kernel: policy_model_forward.1
= control target key start
LH: loop header
LB: loop body
LE: loop exit
PB: predicated region body
PF: predicated region fallthrough
CT: control target
= control target key end

     0   :  { %10 = vsyncpa [#allocation3], 0  ;;  %s311_s18 = smov [#allocation2]   ;;  %s364_s0 = inlined_call_operand.vmem [shape: f32[8,4], index: 0, kind: input, shape index: {}]   ;;  %s365_s1 = inlined_call_operand.vmem [shape: f32[4,128], index: 1, kind: input, shape index: {}]   ;;  %s366_s2 = inlined_call_operand.vmem [shape: f32[1,128], index: 2, kind: input, shape index: {}]   ;;  %s367_s3 = inlined_call_operand.hbm [shape: f32[128,128], index: 3, kind: input, shape index: {}]   ;;  %s368_s4 = inlined_call_operand.vmem [shape: f32[1,128], index: 4, kind: input, shape index: {}]   ;;  %s369_s5 = inlined_call_operand.vmem [shape: f32[8,128], index: 5, kind: output, shape index: {}]  }
   0x1   :  { %s22_s19 = sshll.u32 %s311_s18, 4  ;;  %s23_s19 = int_to_ptr.vmem [resolvable:$true] %s22_s19 }
   0x2   :  { %s297_s20 = scalar_lea.vmem %s23_s19, 2048  ;;  %p302_p1 = scmp.lt.s32.totalorder %s23_s19, %s23_s19 }
   0x3   :  { %p298_p0 = scmp.ne.s32.totalorder %s23_s19, %s297_s20  ;;  %p303_p2 = scmp.lt.s32.totalorder %s297_s20, %s297_s20 }
   0x5   :  { %p304_p3 = por %p303_p2, %p302_p1 }
   0x7   :  { %p305_p4 = pnand %p304_p3, %p298_p0 }
   0x9   :  { %308 = shalt.err (!%p305_p4)
}
   0xa   :  { %s312_s21 = smov 128   ;;  %s313_s22 = smov 8  }
   0xb   :  { %28 = dma.hbm_to_vmem [thread:$0]  %s367_s3, 2048, %s23_s19, [#allocation3], %s312_s21, %s312_s21, %s313_s22  }
   0xc   :  { %309 = dma.done.wait [#allocation3], 2048  }
   0xd   :  { %310 = vsyncadd [#allocation3], 4294965248  ;;  %v314_v0 = vmov 0.0   ;;  %vm315_vm0 = vmmov 0   ;;  %vm47_vm1 = vcmask 1043456   ;;  %vm43_vm2 = vcmask 31744  }
   0xe   :  { %244 = vmatprep.subr.mxu0 %v314_v0  ;;  %246 = vmatprep.mubr.msk.f32.mxu0 %vm315_vm0, %v314_v0  ;;  %v35_v1 = vld [vmem:[%s365_s1] sm:$0xf]  ;;  %v137_v3 = vld [vmem:[#allocation2 + $0x78] sm:$0xff]  ;;  %v136_v4 = vld [vmem:[#allocation2 + $0x70] sm:$0xff] }
   0xf   :  { %249 = vmatprep.subr.mxu1 %v314_v0  ;;  %281 = vmatprep.mubr.msk.f32.mxu1 %vm315_vm0, %v314_v0  ;;  %v34_v2 = vld [vmem:[%s364_s0] sm:$0xff]  ;;  %v135_v5 = vld [vmem:[#allocation2 + $0x68] sm:$0xff]  ;;  %v133_v7 = vld [vmem:[#allocation2 + $0x58] sm:$0xff] }
  0x10   :  { %245 = vmatpush3.msk.msra.mxu0 %vm47_vm1, %v35_v1  ;;  %250 = vmatpush3.msra.mxu1 %v137_v3  ;;  %v134_v6 = vld [vmem:[#allocation2 + $0x60] sm:$0xff]  ;;  %v132_v8 = vld [vmem:[#allocation2 + $0x50] sm:$0xff]  ;;  %v131_v9 = vld [vmem:[#allocation2 + $0x48] sm:$0xff] }
  0x11   :  { %247 = vmatmul.mubr.msk.f32.vlgmr.msra.gmra.mxu0 %vm43_vm2, %v34_v2  ;;  %251 = vmatprep.subr.mxu1 %v314_v0  ;;  %v130_v10 = vld [vmem:[#allocation2 + $0x40] sm:$0xff]  ;;  %v129_v11 = vld [vmem:[#allocation2 + $0x38] sm:$0xff]  ;;  %v128_v12 = vld [vmem:[#allocation2 + $0x30] sm:$0xff] }
  0x12   :  { %252 = vmatpush3.msra.mxu1 %v136_v4  ;;  %v127_v13 = vld [vmem:[#allocation2 + $0x28] sm:$0xff]  ;;  %v126_v14 = vld [vmem:[#allocation2 + $0x20] sm:$0xff]  ;;  %v125_v15 = vld [vmem:[#allocation2 + $0x18] sm:$0xff] }
  0x13   :  { %253 = vmatprep.subr.mxu1 %v314_v0  ;;  %v124_v16 = vld [vmem:[#allocation2 + $0x10] sm:$0xff]  ;;  %v123_v17 = vld [vmem:[#allocation2 + $0x8] sm:$0xff]  ;;  %v122_v18 = vld [vmem:[#allocation2] sm:$0xff] }
  0x14   :  { %254 = vmatpush3.msra.mxu1 %v135_v5  ;;  %v221_v19 = vld [vmem:[%s366_s2] ss:$0 sm:$0xff] }
  0x15   :  { %255 = vmatprep.subr.mxu1 %v314_v0  ;;  %v224_v24 = vld [vmem:[%s368_s4] ss:$0 sm:$0xff] }
  0x16   :  { %256 = vmatpush3.msra.mxu1 %v134_v6 }
  0x17   :  { %257 = vmatprep.subr.mxu1 %v314_v0 }
  0x18   :  { %258 = vmatpush3.msra.mxu1 %v133_v7 }
  0x19   :  { %259 = vmatprep.subr.mxu1 %v314_v0 }
  0x1a   :  { %260 = vmatpush3.msra.mxu1 %v132_v8 }
  0x1b   :  { %261 = vmatprep.subr.mxu1 %v314_v0 }
  0x1c   :  { %262 = vmatpush3.msra.mxu1 %v131_v9 }
  0x1d   :  { %263 = vmatprep.subr.mxu1 %v314_v0 }
  0x1e   :  { %264 = vmatpush3.msra.mxu1 %v130_v10 }
  0x1f   :  { %265 = vmatprep.subr.mxu1 %v314_v0 }
  0x20   :  { %266 = vmatpush3.msra.mxu1 %v129_v11 }
  0x21   :  { %267 = vmatprep.subr.mxu1 %v314_v0 }
  0x22   :  { %268 = vmatpush3.msra.mxu1 %v128_v12 }
  0x23   :  { %269 = vmatprep.subr.mxu1 %v314_v0 }
  0x24   :  { %270 = vmatpush3.msra.mxu1 %v127_v13 }
  0x25   :  { %271 = vmatprep.subr.mxu1 %v314_v0 }
  0x26   :  { %272 = vmatpush3.msra.mxu1 %v126_v14 }
  0x27   :  { %273 = vmatprep.subr.mxu1 %v314_v0 }
  0x28   :  { %274 = vmatpush3.msra.mxu1 %v125_v15 }
  0x29   :  { %275 = vmatprep.subr.mxu1 %v314_v0 }
  0x2a   :  { %276 = vmatpush3.msra.mxu1 %v124_v16 }
  0x2b   :  { %277 = vmatprep.subr.mxu1 %v314_v0 }
  0x2c   :  { %278 = vmatpush3.msra.mxu1 %v123_v17 }
  0x2d   :  { %279 = vmatprep.subr.mxu1 %v314_v0 }
  0x2e   :  { %280 = vmatpush3.msra.mxu1 %v122_v18 }
  0xd1   :  { %v117_v20 = vpop.f32.mrf.mxu0 }
  0xd2   :  { %v118_v21 = vadd.f32 %v221_v19, %v117_v20 }
  0xd3   :  { %v248_v22 = vpop.f32.mrf.mxu0 }
  0xd4   :  { %v121_v23 = vmax.f32 %v118_v21, 0.0 }
  0xd6   :  { %282 = vmatmul.mubr.f32.vlgmr.msra.gmra.mxu1 %v121_v23 }
 0x196   :  { %v211_v25 = vpop.f32.mrf.mxu1 }
 0x197   :  { %v212_v26 = vadd.f32 %v224_v24, %v211_v25 }
 0x198   :  { %v283_v27 = vpop.f32.mrf.mxu1 }
 0x199   :  { %215 = vst [vmem:[%s369_s5] sm:$0xff] %v212_v26 }
 0x19a   :  { %220 = vsyncpa [#allocation3], 1 }

</bundles_post_ra>
